<compile_context>
chip_gen: v6e
topology: v6e:2x2x1
jax: 0.10.0
libtpu: 0.0.40
codegen_flags: <defaults>
</compile_context>

<pallas_src>
import math

import jax
import jax.numpy as jnp
from jax.experimental import pallas as pl
from jax.experimental.pallas import tpu as pltpu

_LANES = 128                      # vreg lane width (fast axis of every block)
_TARGET_X_BLOCK_BYTES = 4 << 20   # ~4 MiB of fresh x per grid step
_VMEM_LIMIT_BYTES = 48 << 20      # headroom for double-buffered x/pe/out blocks


def _add_pe_kernel(x_ref, pe_ref, o_ref):
    # x_ref/o_ref: (B_blk, block_rows, C) block of x / out
    # pe_ref     : (block_rows, C) positional-encoding block, broadcast over
    #              the leading (batch) axis of the x block.
    o_ref[...] = x_ref[...] + pe_ref[...]


def make_pe_table(d_model: int, max_len: int = 5000) -> jnp.ndarray:
    """Deterministic positional-encoding buffer, exactly as in __init__."""
    if d_model % 2 != 0:
        # Same latent constraint as the PyTorch original (odd d_model breaks
        # the 1::2 assignment there too).
        raise ValueError("d_model must be even")
    position = jnp.arange(0, max_len, dtype=jnp.float32)[:, None]           # (max_len, 1)
    div_term = jnp.exp(
        jnp.arange(0, d_model, 2, dtype=jnp.float32)
        * -(math.log(10000.0) / d_model)
    )                                                                        # (d_model/2,)
    pe = jnp.zeros((max_len, d_model), dtype=jnp.float32)
    pe = pe.at[:, 0::2].set(jnp.sin(position * div_term))
    pe = pe.at[:, 1::2].set(jnp.cos(position * div_term))
    return pe[None, :, :]                                                    # (1, max_len, d_model)


def _pick_blocks(B: int, R: int, C: int, itemsize: int):
    """Choose (batch_block, row_block) targeting ~_TARGET_X_BLOCK_BYTES per step."""
    bytes_per_row = max(C * itemsize, 1)
    # Largest row block (multiple of 8) within the per-step byte target.
    max_block_rows = max(8, (_TARGET_X_BLOCK_BYTES // bytes_per_row) // 8 * 8)
    if R <= max_block_rows:
        block_rows = R                      # full extent: always layout-legal
        per_batch_bytes = max(block_rows * bytes_per_row, 1)
        want_bblk = max(1, _TARGET_X_BLOCK_BYTES // per_batch_bytes)
        b_blk = 1
        for d in range(1, B + 1):           # largest divisor of B <= want_bblk
            if B % d == 0 and d <= want_bblk:
                b_blk = d
    else:
        block_rows = max_block_rows         # multiple of 8
        b_blk = 1
    return b_blk, block_rows


def _add_pe(x3: jnp.ndarray, pe2: jnp.ndarray) -> jnp.ndarray:
    """x3: (B, R, C); pe2: (R, C).  Returns x3 + pe2 (broadcast over batch)."""
    B, R, C = x3.shape
    itemsize = jnp.dtype(x3.dtype).itemsize
    b_blk, block_rows = _pick_blocks(B, R, C, itemsize)
    num_row_tiles = pl.cdiv(R, block_rows)
    num_batch_tiles = B // b_blk

    return pl.pallas_call(
        _add_pe_kernel,
        out_shape=jax.ShapeDtypeStruct((B, R, C), x3.dtype),
        grid_spec=pl.GridSpec(
            # Row tiles outer ("parallel": megacore-sharded on v7x), batch
            # INNER ("arbitrary"): pe's block index is constant across the
            # batch sweep, so its HBM->VMEM copy is elided for all but the
            # first batch step of every row tile (per core).
            grid=(num_row_tiles, num_batch_tiles),
            in_specs=[
                pl.BlockSpec((b_blk, block_rows, C), lambda t, b: (b, t, 0)),
                pl.BlockSpec((block_rows, C), lambda t, b: (t, 0)),
            ],
            out_specs=pl.BlockSpec((b_blk, block_rows, C), lambda t, b: (b, t, 0)),
        ),
        compiler_params=pltpu.CompilerParams(
            dimension_semantics=("parallel", "arbitrary"),
            vmem_limit_bytes=_VMEM_LIMIT_BYTES,
        ),
        cost_estimate=pl.CostEstimate(
            flops=B * R * C,
            transcendentals=0,
            bytes_accessed=(2 * B + 1) * R * C * itemsize,  # x read + out write + pe once
        ),
    )(x3, pe2)


def positional_encoding_forward(x: jnp.ndarray, pe: jnp.ndarray) -> jnp.ndarray:
    """x: (B, S, D); pe: (1, max_len, D).  Returns x + pe[:, :S, :]."""
    B, S, D = x.shape
    if S > pe.shape[1]:
        raise ValueError(f"sequence length {S} exceeds max_len {pe.shape[1]}")

    # pe is tiny relative to x traffic; slicing/casting it in the wrapper is
    # cheap.  (Result dtype stays x.dtype — see module docstring note.)
    pe_s = pe[0, :S, :].astype(x.dtype)       # (S, D)

    flat_len = S * D
    if flat_len % _LANES == 0:
        # Lane-dense fast path: free row-major reshape, unmasked 128-lane stores.
        rows = flat_len // _LANES
        x_in = x.reshape(B, rows, _LANES)
        pe_in = pe_s.reshape(rows, _LANES)
    else:
        # Remainder path: run directly on (B, S, D) with D as the lane dim.
        # No wrapper-side jnp.pad / output slice (those cost extra HBM passes).
        x_in = x
        pe_in = pe_s

    out = _add_pe(x_in, pe_in)
    return out.reshape(B, S, D)


if __name__ == "__main__":
    # Small shapes consistent with the module: batch=2, seq=8, d_model=32.
    B, S, D = 2, 8, 32
    key = jax.random.PRNGKey(0)
    x = jax.random.normal(key, (B, S, D), dtype=jnp.float32)

    pe = make_pe_table(d_model=D, max_len=5000)

    out = jax.block_until_ready(positional_encoding_forward(x, pe))

    # Reference check (pure JAX) — same math as the PyTorch forward.
    ref = x + pe[:, :S, :]
    assert out.shape == (B, S, D)
    assert jnp.allclose(out, ref, atol=1e-6, rtol=1e-6)

    # Also exercise the remainder path (S*D not a multiple of 128): no wrapper
    # pad/slice, D is the lane dim.
    S2, D2 = 7, 24
    x2 = jax.random.normal(jax.random.PRNGKey(0), (B, S2, D2), dtype=jnp.float32)
    pe2 = make_pe_table(d_model=D2, max_len=64)
    out2 = jax.block_until_ready(positional_encoding_forward(x2, pe2))
    ref2 = x2 + pe2[:, :S2, :]
    assert jnp.allclose(out2, ref2, atol=1e-6, rtol=1e-6)

    print("KERNEL_OK")
</pallas_src>

<mosaic_0001>
module attributes {stable_mosaic.version = 11 : i64} {
  func.func @_add_pe_kernel(%arg0: i32, %arg1: i32, %arg2: memref<2x2x128xf32, #tpu.memory_space<vmem>>, %arg3: memref<2x128xf32, #tpu.memory_space<vmem>>, %arg4: memref<2x2x128xf32, #tpu.memory_space<vmem>>) attributes {dimension_semantics = [#tpu.dimension_semantics<parallel>, #tpu.dimension_semantics<arbitrary>], iteration_bounds = array<i64: 1, 1>, scalar_prefetch = 0 : i64, scratch_operands = 0 : i64, tpu.core_type = #tpu.core_type<tc>, window_params = [{transform_indices = @transform_0, window_bounds = array<i64: 2, 2, 128>}, {transform_indices = @transform_1, window_bounds = array<i64: 2, 128>}, {transform_indices = @transform_2, window_bounds = array<i64: 2, 2, 128>}]} {
    %c0 = arith.constant 0 : index
    %c0_0 = arith.constant 0 : index
    %c0_1 = arith.constant 0 : index
    %0 = vector.load %arg2[%c0, %c0_0, %c0_1] : memref<2x2x128xf32, #tpu.memory_space<vmem>>, vector<2x2x128xf32>
    %c0_2 = arith.constant 0 : index
    %c0_3 = arith.constant 0 : index
    %1 = vector.load %arg3[%c0_2, %c0_3] : memref<2x128xf32, #tpu.memory_space<vmem>>, vector<2x128xf32>
    %2 = vector.shape_cast %1 : vector<2x128xf32> to vector<1x2x128xf32>
    %3 = vector.broadcast %2 : vector<1x2x128xf32> to vector<2x2x128xf32>
    %4 = arith.addf %0, %3 : vector<2x2x128xf32>
    %c0_4 = arith.constant 0 : index
    %c0_5 = arith.constant 0 : index
    %c0_6 = arith.constant 0 : index
    %5 = vector.load %arg4[%c0_4, %c0_5, %c0_6] : memref<2x2x128xf32, #tpu.memory_space<vmem>>, vector<2x2x128xf32>
    tpu.vector_store %arg4[%c0_4, %c0_5, %c0_6], %4 {strides = array<i32>} : memref<2x2x128xf32, #tpu.memory_space<vmem>>, vector<2x2x128xf32>,
    return
  }
  func.func @transform_0(%arg0: i32, %arg1: i32) -> (i32, i32, i32) {
    %c0_i32 = arith.constant 0 : i32
    %c0_i32_0 = arith.constant 0 : i32
    return %arg1, %arg0, %c0_i32 : i32, i32, i32
  }
  func.func @transform_1(%arg0: i32, %arg1: i32) -> (i32, i32) {
    %c0_i32 = arith.constant 0 : i32
    %c0_i32_0 = arith.constant 0 : i32
    return %arg0, %c0_i32 : i32, i32
  }
  func.func @transform_2(%arg0: i32, %arg1: i32) -> (i32, i32, i32) {
    %c0_i32 = arith.constant 0 : i32
    %c0_i32_0 = arith.constant 0 : i32
    return %arg1, %arg0, %c0_i32 : i32, i32, i32
  }
}

</mosaic_0001>

<bundles_post_ra>
// kernel: tpu_custom_call.1
= control target key start
LH: loop header
LB: loop body
LE: loop exit
PB: predicated region body
PF: predicated region fallthrough
CT: control target
= control target key end

     0   :  { %7 = vsyncpa [#allocation3], 0  ;;  %s169_s0 = inlined_call_operand.hbm [shape: f32[2,2,128], index: 0, kind: input, shape index: {}]   ;;  %s170_s1 = inlined_call_operand.hbm [shape: f32[2,128], index: 1, kind: input, shape index: {}]   ;;  %s171_s2 = inlined_call_operand.hbm [shape: f32[2,2,128], index: 2, kind: output, shape index: {}]  }
   0x1   :  { %8 = vsyncpa [#allocation6], 0 }
   0x2   :  { %9 = vsyncpa [#allocation4], 0  ;;  %s134_s9 = smov [#allocation2]  }
   0x3   :  { %s15_s10 = sshll.u32 %s134_s9, 4  ;;  %s16_s10 = int_to_ptr.vmem [resolvable:$true] %s15_s10 }
   0x4   :  { %s76_s11 = scalar_lea.vmem %s16_s10, 64  ;;  %p81_p1 = scmp.lt.s32.totalorder %s16_s10, %s16_s10 }
   0x5   :  { %p77_p0 = scmp.ne.s32.totalorder %s16_s10, %s76_s11  ;;  %p82_p2 = scmp.lt.s32.totalorder %s76_s11, %s76_s11 }
   0x7   :  { %p83_p3 = por %p82_p2, %p81_p1 }
   0x9   :  { %p84_p4 = pnand %p83_p3, %p77_p0 }
   0xb   :  { %87 = shalt.err (!%p84_p4)
}
   0xc   :  { %s135_s12 = smov 32   ;;  %s136_s13 = smov 2  }
   0xd   :  { %21 = dma.hbm_to_vmem [thread:$0]  %s169_s0, 64, %s16_s10, [#allocation3], %s135_s12, %s135_s12, %s136_s13  }
   0xe   :  { %s137_s16 = smov [#allocation5]  }
   0xf   :  { %s28_s17 = sshll.u32 %s137_s16, 4  ;;  %s29_s17 = int_to_ptr.vmem [resolvable:$true] %s28_s17 }
  0x10   :  { %s96_s18 = scalar_lea.vmem %s29_s17, 32  ;;  %p101_p6 = scmp.lt.s32.totalorder %s29_s17, %s29_s17 }
  0x11   :  { %p97_p5 = scmp.ne.s32.totalorder %s29_s17, %s96_s18  ;;  %p102_p7 = scmp.lt.s32.totalorder %s96_s18, %s96_s18 }
  0x13   :  { %p103_p8 = por %p102_p7, %p101_p6 }
  0x15   :  { %p104_p9 = pnand %p103_p8, %p97_p5 }
  0x17   :  { %107 = shalt.err (!%p104_p9)
}
  0x18   :  { %31 = dma.hbm_to_vmem [thread:$0]  %s170_s1, 32, %s29_s17, [#allocation6]  }
  0x19   :  { %128 = dma.done.wait [#allocation3], 64  }
  0x1a   :  { %129 = vsyncadd [#allocation3], 4294967232 }
  0x1b   :  { %130 = dma.done.wait [#allocation6], 32  }
  0x1c   :  { %131 = vsyncadd [#allocation6], 4294967264  ;;  %s138_s21 = smov [#allocation7]   ;;  %v38_v0 = vld [vmem:[#allocation2] sm:$0x3] }
  0x1d   :  { %s50_s0 = sshll.u32 %s138_s21, 4  ;;  %v40_v1 = vld [vmem:[#allocation5] sm:$0x3]  ;;  %v39_v2 = vld [vmem:[#allocation2 + $0x2] sm:$0x3]  ;;  %s51_s0 = int_to_ptr.vmem [resolvable:$true] %s50_s0 }
  0x1e   :  { %v41_v3 = vadd.f32 %v40_v1, %v38_v0  ;;  %v42_v4 = vadd.f32 %v40_v1, %v39_v2  ;;  %s108_s22 = scalar_lea.vmem %s51_s0, 64  ;;  %p113_p11 = scmp.lt.s32.totalorder %s51_s0, %s51_s0 }
  0x1f   :  { %p109_p10 = scmp.ne.s32.totalorder %s51_s0, %s108_s22  ;;  %p114_p12 = scmp.lt.s32.totalorder %s108_s22, %s108_s22 }
  0x20   :  { %43 = vst [vmem:[#allocation7] sm:$0x3] %v41_v3  ;;  %44 = vst [vmem:[#allocation7 + $0x2] sm:$0x3] %v42_v4 }
  0x21   :  { %p115_p13 = por %p114_p12, %p113_p11 }
  0x23   :  { %p116_p0 = pnand %p115_p13, %p109_p10 }
  0x25   :  { %119 = shalt.err (!%p116_p0)
}
  0x26   :  { %56 = dma.vmem_to_hbm [thread:$0]  %s51_s0, 64, %s171_s2, [#allocation4], %s135_s12, %s135_s12, %s136_s13  }
  0x27   :  { %132 = dma.done.wait [#allocation4], 64  }
  0x28   :  { %133 = vsyncadd [#allocation4], 4294967232 }
  0x29   :  { %60 = vsyncpa [#allocation3], 1 }
  0x2a   :  { %61 = vsyncpa [#allocation6], 1 }
  0x2b   :  { %62 = vsyncpa [#allocation4], 1 }

</bundles_post_ra>
